<compile_context>
chip_gen: v7x
topology: tpu7x:2x2x1
jax: 0.10.0
libtpu: 0.0.40
codegen_flags: <defaults>
</compile_context>

<pallas_src>
import functools

import jax
import jax.numpy as jnp
from jax.experimental import pallas as pl
from jax.experimental.pallas import tpu as pltpu

LANE = 128
SUBLANE = 8


def _round_up(x, m):
    return ((x + m - 1) // m) * m


# ----------------------------------------------------------------------------
# Kernel: the entire MLP on one row tile.
# refs = (x_ref, w0, b0, w1, b1, ..., w_{L-1}, b_{L-1}, o_ref)
# ----------------------------------------------------------------------------
def _mlp_fused_kernel(*refs, n_layers, approximate_gelu):
    x_ref = refs[0]
    o_ref = refs[1 + 2 * n_layers]

    h = x_ref[...]                                   # [tm, d_in] (unpadded)
    for li in range(n_layers):
        w_ref = refs[1 + 2 * li]                     # [d_prev, d_next]
        b_ref = refs[2 + 2 * li]                     # [1, d_next] (f32)
        # MXU matmul in the weight dtype (bf16 on v6e/v7x), f32 accumulation.
        y = jnp.dot(h.astype(w_ref.dtype), w_ref[...],
                    preferred_element_type=jnp.float32)
        y = y + b_ref[...].astype(jnp.float32)       # bias broadcast (VPU)
        if li != n_layers - 1:
            # approximate=True  -> tanh GELU (EUP slot, fast on all gens)
            # approximate=False -> exact erf GELU (torch nn.GELU() default)
            y = jax.nn.gelu(y, approximate=approximate_gelu)
        h = y
    o_ref[...] = h.astype(o_ref.dtype)               # [tm, d_out] (unpadded)


# ----------------------------------------------------------------------------
# Parameter construction (matches torch nn.Linear shapes / default init).
# ----------------------------------------------------------------------------
def init_mlp_params(key, d_in_feats, d_out_feats, n_dense_layers,
                    d_hidden_feats=None):
    """Returns list of (w [fan_in, fan_out], b [1, fan_out]) in fp32."""
    d_hidden = d_out_feats if d_hidden_feats is None else d_hidden_feats

    def make_linear(k, fan_in, fan_out):
        kw, kb = jax.random.split(k)
        bound = 1.0 / jnp.sqrt(fan_in)
        w = jax.random.uniform(kw, (fan_in, fan_out), jnp.float32,
                               -bound, bound)
        b = jax.random.uniform(kb, (1, fan_out), jnp.float32, -bound, bound)
        return w, b

    keys = jax.random.split(key, n_dense_layers)
    params = [make_linear(keys[0], d_in_feats, d_hidden)]
    for i in range(n_dense_layers - 2):
        params.append(make_linear(keys[1 + i], d_hidden, d_hidden))
    params.append(make_linear(keys[-1], d_hidden, d_out_feats))
    return params


def pad_params(params, compute_dtype=jnp.bfloat16):
    """Pad only the *hidden* feature dims up to a lane multiple (128).

    The first layer's fan_in (the HBM input width) and the last layer's
    fan_out (the HBM output width) stay unpadded so HBM-facing DMAs move only
    real bytes.  Hidden activations never leave VMEM, so padding them is free.
    Weights are cast to `compute_dtype` (bf16 recommended on v6e/v7x);
    biases stay f32 (added after the f32 accumulation).  Done once, offline.
    """
    n_layers = len(params)
    padded = []
    for li, (w, b) in enumerate(params):
        fi, fo = w.shape
        fi_p = fi if li == 0 else _round_up(fi, LANE)
        fo_p = fo if li == n_layers - 1 else _round_up(fo, LANE)
        wp = jnp.zeros((fi_p, fo_p), compute_dtype)
        wp = wp.at[:fi, :fo].set(w.astype(compute_dtype))
        bp = jnp.zeros((1, fo_p), jnp.float32)
        bp = bp.at[:, :fo].set(b.astype(jnp.float32))
        padded.append((wp, bp))
    return padded


# ----------------------------------------------------------------------------
# Row-tile heuristic.
# ----------------------------------------------------------------------------
def _pick_row_tile(n, tm):
    if tm is not None:
        return max(SUBLANE, _round_up(tm, SUBLANE))
    # Mem-bound kernel: 512-1024 row tiles hit ~85% of HBM roofline; shrink so
    # the grid still has >= 4 steps (2 per TensorCore on v7x megacore) when the
    # row count allows it.  Always a multiple of the 8-row sublane.
    t = 1024 if pl.cdiv(n, 1024) >= 8 else 512
    while t > SUBLANE and pl.cdiv(n, t) < 4:
        t //= 2
    return max(t, SUBLANE)


# ----------------------------------------------------------------------------
# Forward: one fused pallas_call over row tiles.  No pad/slice HBM passes.
# ----------------------------------------------------------------------------
def mlp_forward(padded_params, feats, *, approximate_gelu=True, tm=None,
                out_dtype=None):
    """feats: [N, d_in] -> [N, d_out]."""
    n, d_in = feats.shape
    n_layers = len(padded_params)
    assert padded_params[0][0].shape[0] == d_in, "d_in mismatch with params"
    d_out = padded_params[-1][0].shape[1]
    out_dtype = feats.dtype if out_dtype is None else out_dtype

    tm = _pick_row_tile(n, tm)
    grid = (pl.cdiv(n, tm),)     # ragged last tile is masked by Pallas

    kernel = functools.partial(_mlp_fused_kernel, n_layers=n_layers,
                               approximate_gelu=approximate_gelu)

    in_specs = [pl.BlockSpec((tm, d_in), lambda i: (i, 0))]
    flat_params = []
    for w, b in padded_params:
        # Constant index_map -> weights/biases resident in VMEM for all steps.
        in_specs.append(pl.BlockSpec(w.shape, lambda i: (0, 0)))
        in_specs.append(pl.BlockSpec(b.shape, lambda i: (0, 0)))
        flat_params += [w, b]

    return pl.pallas_call(
        kernel,
        out_shape=jax.ShapeDtypeStruct((n, d_out), out_dtype),
        grid=grid,
        in_specs=in_specs,
        out_specs=pl.BlockSpec((tm, d_out), lambda i: (i, 0)),
        compiler_params=pltpu.CompilerParams(
            dimension_semantics=("parallel",)),
    )(feats, *flat_params)


# ----------------------------------------------------------------------------
# Demo / self-check.
# ----------------------------------------------------------------------------
if __name__ == "__main__":
    # Shapes consistent with the module's forward:
    # d_in = 24, d_hidden = 32, d_out = 8, 3 dense layers.
    d_in_feats, d_out_feats, d_hidden_feats = 24, 8, 32
    n_dense_layers = 3

    key = jax.random.PRNGKey(0)
    k_params, k_x = jax.random.split(key)
    params = init_mlp_params(k_params, d_in_feats, d_out_feats,
                             n_dense_layers, d_hidden_feats)

    def ref_forward(x, ps, approximate):
        h = x
        for li, (w, b) in enumerate(ps):
            h = h @ w + b
            if li != len(ps) - 1:
                h = jax.nn.gelu(h, approximate=approximate)
        return h

    # ---- f32 path, tanh GELU, N divisible by the tile ---------------------
    N = 16
    feats = jax.random.normal(k_x, (N, d_in_feats), jnp.float32)
    padded_f32 = pad_params(params, compute_dtype=jnp.float32)
    out32 = jax.block_until_ready(
        mlp_forward(padded_f32, feats, approximate_gelu=True))
    ref32 = ref_forward(feats, params, approximate=True)
    assert out32.shape == (N, d_out_feats)
    err32 = float(jnp.max(jnp.abs(out32 - ref32)))
    assert jnp.allclose(out32, ref32, atol=2e-2, rtol=2e-2), err32

    # ---- bf16-at-HBM path (v6e/v7x), ragged N (masked last row tile) ------
    N2 = 53
    feats2 = jax.random.normal(jax.random.PRNGKey(1), (N2, d_in_feats),
                               jnp.float32)
    padded_bf16 = pad_params(params, compute_dtype=jnp.bfloat16)
    out_bf16 = jax.block_until_ready(
        mlp_forward(padded_bf16, feats2.astype(jnp.bfloat16),
                    approximate_gelu=True, out_dtype=jnp.bfloat16))
    ref2 = ref_forward(feats2, params, approximate=True)
    assert out_bf16.shape == (N2, d_out_feats)
    err16 = float(jnp.max(jnp.abs(out_bf16.astype(jnp.float32) - ref2)))
    assert jnp.allclose(out_bf16.astype(jnp.float32), ref2,
                        atol=5e-2, rtol=5e-2), err16

    print("KERNEL_OK")
</pallas_src>

<mosaic_0001>
module attributes {stable_mosaic.version = 11 : i64} {
  func.func @_mlp_fused_kernel(%arg0: i32, %arg1: memref<8x24xf32, #tpu.memory_space<vmem>>, %arg2: memref<24x128xf32, #tpu.memory_space<vmem>>, %arg3: memref<1x128xf32, #tpu.memory_space<vmem>>, %arg4: memref<128x128xf32, #tpu.memory_space<vmem>>, %arg5: memref<1x128xf32, #tpu.memory_space<vmem>>, %arg6: memref<128x8xf32, #tpu.memory_space<vmem>>, %arg7: memref<1x8xf32, #tpu.memory_space<vmem>>, %arg8: memref<8x8xf32, #tpu.memory_space<vmem>>) attributes {dimension_semantics = [#tpu.dimension_semantics<parallel>], iteration_bounds = array<i64: 2>, scalar_prefetch = 0 : i64, scratch_operands = 0 : i64, tpu.core_type = #tpu.core_type<tc>, window_params = [{transform_indices = @transform_0, window_bounds = array<i64: 8, 24>}, {pipeline_mode = #tpu.pipeline_mode<synchronous>, transform_indices = @transform_1, window_bounds = array<i64: 24, 128>}, {pipeline_mode = #tpu.pipeline_mode<synchronous>, transform_indices = @transform_2, window_bounds = array<i64: 1, 128>}, {pipeline_mode = #tpu.pipeline_mode<synchronous>, transform_indices = @transform_3, window_bounds = array<i64: 128, 128>}, {pipeline_mode = #tpu.pipeline_mode<synchronous>, transform_indices = @transform_4, window_bounds = array<i64: 1, 128>}, {pipeline_mode = #tpu.pipeline_mode<synchronous>, transform_indices = @transform_5, window_bounds = array<i64: 128, 8>}, {pipeline_mode = #tpu.pipeline_mode<synchronous>, transform_indices = @transform_6, window_bounds = array<i64: 1, 8>}, {transform_indices = @transform_7, window_bounds = array<i64: 8, 8>}]} {
    %c0 = arith.constant 0 : index
    %c0_0 = arith.constant 0 : index
    %0 = vector.load %arg1[%c0, %c0_0] : memref<8x24xf32, #tpu.memory_space<vmem>>, vector<8x24xf32>
    %c0_1 = arith.constant 0 : index
    %c0_2 = arith.constant 0 : index
    %1 = vector.load %arg2[%c0_1, %c0_2] : memref<24x128xf32, #tpu.memory_space<vmem>>, vector<24x128xf32>
    %cst = arith.constant dense<0.000000e+00> : vector<8x128xf32>
    %2 = tpu.matmul %0, %1, %cst {dimension_numbers = #tpu.dot_dimension_numbers<[1], [0], [0], [1], [0, 0, 1, 1], [], []>} : vector<8x24xf32>, vector<24x128xf32>, vector<8x128xf32> -> vector<8x128xf32>
    %c0_3 = arith.constant 0 : index
    %c0_4 = arith.constant 0 : index
    %3 = vector.load %arg3[%c0_3, %c0_4] : memref<1x128xf32, #tpu.memory_space<vmem>>, vector<1x128xf32>
    %4 = vector.broadcast %3 : vector<1x128xf32> to vector<8x128xf32>
    %5 = arith.addf %2, %4 : vector<8x128xf32>
    %6 = arith.mulf %5, %5 : vector<8x128xf32>
    %7 = arith.mulf %5, %6 : vector<8x128xf32>
    %cst_5 = arith.constant 4.471500e-02 : f32
    %8 = vector.broadcast %cst_5 : f32 to vector<8x128xf32>
    %9 = arith.mulf %8, %7 : vector<8x128xf32>
    %10 = arith.addf %5, %9 : vector<8x128xf32>
    %cst_6 = arith.constant 0.797884583 : f32
    %11 = vector.broadcast %cst_6 : f32 to vector<8x128xf32>
    %12 = arith.mulf %11, %10 : vector<8x128xf32>
    %13 = math.tanh %12 : vector<8x128xf32>
    %cst_7 = arith.constant 1.000000e+00 : f32
    %14 = vector.broadcast %cst_7 : f32 to vector<8x128xf32>
    %15 = arith.addf %14, %13 : vector<8x128xf32>
    %cst_8 = arith.constant 5.000000e-01 : f32
    %16 = vector.broadcast %cst_8 : f32 to vector<8x128xf32>
    %17 = arith.mulf %16, %15 : vector<8x128xf32>
    %18 = arith.mulf %5, %17 : vector<8x128xf32>
    %c0_9 = arith.constant 0 : index
    %c0_10 = arith.constant 0 : index
    %19 = vector.load %arg4[%c0_9, %c0_10] : memref<128x128xf32, #tpu.memory_space<vmem>>, vector<128x128xf32>
    %cst_11 = arith.constant dense<0.000000e+00> : vector<8x128xf32>
    %20 = tpu.matmul %18, %19, %cst_11 {dimension_numbers = #tpu.dot_dimension_numbers<[1], [0], [0], [1], [0, 0, 1, 1], [], []>} : vector<8x128xf32>, vector<128x128xf32>, vector<8x128xf32> -> vector<8x128xf32>
    %c0_12 = arith.constant 0 : index
    %c0_13 = arith.constant 0 : index
    %21 = vector.load %arg5[%c0_12, %c0_13] : memref<1x128xf32, #tpu.memory_space<vmem>>, vector<1x128xf32>
    %22 = vector.broadcast %21 : vector<1x128xf32> to vector<8x128xf32>
    %23 = arith.addf %20, %22 : vector<8x128xf32>
    %24 = arith.mulf %23, %23 : vector<8x128xf32>
    %25 = arith.mulf %23, %24 : vector<8x128xf32>
    %cst_14 = arith.constant 4.471500e-02 : f32
    %26 = vector.broadcast %cst_14 : f32 to vector<8x128xf32>
    %27 = arith.mulf %26, %25 : vector<8x128xf32>
    %28 = arith.addf %23, %27 : vector<8x128xf32>
    %cst_15 = arith.constant 0.797884583 : f32
    %29 = vector.broadcast %cst_15 : f32 to vector<8x128xf32>
    %30 = arith.mulf %29, %28 : vector<8x128xf32>
    %31 = math.tanh %30 : vector<8x128xf32>
    %cst_16 = arith.constant 1.000000e+00 : f32
    %32 = vector.broadcast %cst_16 : f32 to vector<8x128xf32>
    %33 = arith.addf %32, %31 : vector<8x128xf32>
    %cst_17 = arith.constant 5.000000e-01 : f32
    %34 = vector.broadcast %cst_17 : f32 to vector<8x128xf32>
    %35 = arith.mulf %34, %33 : vector<8x128xf32>
    %36 = arith.mulf %23, %35 : vector<8x128xf32>
    %c0_18 = arith.constant 0 : index
    %c0_19 = arith.constant 0 : index
    %37 = vector.load %arg6[%c0_18, %c0_19] : memref<128x8xf32, #tpu.memory_space<vmem>>, vector<128x8xf32>
    %cst_20 = arith.constant dense<0.000000e+00> : vector<8x8xf32>
    %38 = tpu.matmul %36, %37, %cst_20 {dimension_numbers = #tpu.dot_dimension_numbers<[1], [0], [0], [1], [0, 0, 1, 1], [], []>} : vector<8x128xf32>, vector<128x8xf32>, vector<8x8xf32> -> vector<8x8xf32>
    %c0_21 = arith.constant 0 : index
    %c0_22 = arith.constant 0 : index
    %39 = vector.load %arg7[%c0_21, %c0_22] : memref<1x8xf32, #tpu.memory_space<vmem>>, vector<1x8xf32>
    %40 = vector.broadcast %39 : vector<1x8xf32> to vector<8x8xf32>
    %41 = arith.addf %38, %40 : vector<8x8xf32>
    %c0_23 = arith.constant 0 : index
    %c0_24 = arith.constant 0 : index
    %42 = vector.load %arg8[%c0_23, %c0_24] : memref<8x8xf32, #tpu.memory_space<vmem>>, vector<8x8xf32>
    tpu.vector_store %arg8[%c0_23, %c0_24], %41 {strides = array<i32>} : memref<8x8xf32, #tpu.memory_space<vmem>>, vector<8x8xf32>,
    return
  }
  func.func @transform_0(%arg0: i32) -> (i32, i32) {
    %c0_i32 = arith.constant 0 : i32
    %c0_i32_0 = arith.constant 0 : i32
    return %arg0, %c0_i32 : i32, i32
  }
  func.func @transform_1(%arg0: i32) -> (i32, i32) {
    %c0_i32 = arith.constant 0 : i32
    %c0_i32_0 = arith.constant 0 : i32
    %c0_i32_1 = arith.constant 0 : i32
    return %c0_i32, %c0_i32_0 : i32, i32
  }
  func.func @transform_2(%arg0: i32) -> (i32, i32) {
    %c0_i32 = arith.constant 0 : i32
    %c0_i32_0 = arith.constant 0 : i32
    %c0_i32_1 = arith.constant 0 : i32
    return %c0_i32, %c0_i32_0 : i32, i32
  }
  func.func @transform_3(%arg0: i32) -> (i32, i32) {
    %c0_i32 = arith.constant 0 : i32
    %c0_i32_0 = arith.constant 0 : i32
    %c0_i32_1 = arith.constant 0 : i32
    return %c0_i32, %c0_i32_0 : i32, i32
  }
  func.func @transform_4(%arg0: i32) -> (i32, i32) {
    %c0_i32 = arith.constant 0 : i32
    %c0_i32_0 = arith.constant 0 : i32
    %c0_i32_1 = arith.constant 0 : i32
    return %c0_i32, %c0_i32_0 : i32, i32
  }
  func.func @transform_5(%arg0: i32) -> (i32, i32) {
    %c0_i32 = arith.constant 0 : i32
    %c0_i32_0 = arith.constant 0 : i32
    %c0_i32_1 = arith.constant 0 : i32
    return %c0_i32, %c0_i32_0 : i32, i32
  }
  func.func @transform_6(%arg0: i32) -> (i32, i32) {
    %c0_i32 = arith.constant 0 : i32
    %c0_i32_0 = arith.constant 0 : i32
    %c0_i32_1 = arith.constant 0 : i32
    return %c0_i32, %c0_i32_0 : i32, i32
  }
  func.func @transform_7(%arg0: i32) -> (i32, i32) {
    %c0_i32 = arith.constant 0 : i32
    %c0_i32_0 = arith.constant 0 : i32
    return %arg0, %c0_i32 : i32, i32
  }
}

</mosaic_0001>

<bundles_post_ra>
// kernel: tpu_custom_call.1
= control target key start
LH: loop header
LB: loop body
LE: loop exit
PB: predicated region body
PF: predicated region fallthrough
CT: control target
= control target key end

     0   :  { %12 = vsyncpa [#allocation3], 0  ;;  %s942_s24 = smov 0   ;;  %s1130_s0 = inlined_call_operand.vmem [shape: f32[16,24], index: 0, kind: input, shape index: {}]   ;;  %s1131_s1 = inlined_call_operand.hbm [shape: f32[24,128], index: 1, kind: input, shape index: {}]   ;;  %s1132_s2 = inlined_call_operand.vmem [shape: f32[1,128], index: 2, kind: input, shape index: {}]   ;;  %s1133_s3 = inlined_call_operand.vmem [shape: f32[128,128], index: 3, kind: input, shape index: {}]   ;;  %s1134_s4 = inlined_call_operand.vmem [shape: f32[1,128], index: 4, kind: input, shape index: {}]   ;;  %s1135_s5 = inlined_call_operand.vmem [shape: f32[128,8], index: 5, kind: input, shape index: {}]   ;;  %s1136_s6 = inlined_call_operand.vmem [shape: f32[1,8], index: 6, kind: input, shape index: {}]   ;;  %s1137_s7 = inlined_call_operand.vmem [shape: f32[16,8], index: 7, kind: output, shape index: {}]  }
   0x1 LB: > { %s948_s25 = sadd.s32 4294967295, %s894_s24   ;;  %p647_p0 = scmp.ge.s32.totalorder %s894_s24, 1  ;;  %s894_s24 = sphi %s942_s24, %s18_s24  }
   0x2   : > { %p201_p1 = scmp.lt.s32.totalorder %s894_s24, 3  ;;  %s896_s26 = smov [#allocation2]  }
   0x3   : > { %s213_s27 = sshll.u32 %s896_s26, 4  ;;  %p1138_p3 = scmp.eq.s32.totalorder %s948_s25, 0  ;;  %s214_s27 = int_to_ptr.vmem [resolvable:$true] %s213_s27 }
   0x4   : > { %p952_p2 = pnand %p647_p0, %p201_p1  ;;  %s856_s9 = scalar_lea.hbm %s1131_s1, 384 }
   0x5   : > { %p857_p6 = scmp.ne.s32.totalorder %s1131_s1, %s856_s9  ;;  %p863_p10 = scmp.lt.u32.totalorder %s856_s9, %s1131_s1 }
   0x6   : > { %s1140_s28 = scalar_select %p952_p2, 1, 0 }
   0x7   : > { %p832_p4 = pneg %p952_p2 }
   0x9   : > { %p961_p5 = pnand %p1138_p3, %p832_p4 }
   0xb   : > { %p858_p7 = pneg %p961_p5 }
   0xd   : > { %p859_p8 = pnand %p858_p7, %p857_p6 }
   0xf   : > { %p860_p9 = pneg %p859_p8 }
  0x11   : > { %p865_p11 = pnand %p863_p10, %p860_p9 }
  0x13   : > { %868 = shalt.err (!%p865_p11)
}
  0x14   : > { %s869_s14 = scalar_lea.vmem %s214_s27, 384  ;;  %p877_p1 = scmp.lt.s32.totalorder %s214_s27, %s214_s27 }
  0x15   : > { %p870_p12 = scmp.ne.s32.totalorder %s214_s27, %s869_s14  ;;  %p878_p4 = scmp.lt.s32.totalorder %s869_s14, %s869_s14 }
  0x17   : > { %p872_p13 = pnand %p870_p12, %p858_p7  ;;  %p879_p3 = por %p878_p4, %p877_p1 }
  0x19   : > { %p873_p0 = pneg %p872_p13 }
  0x1b   : > { %p880_p2 = pnand %p879_p3, %p873_p0 }
  0x1d   : > { %883 = shalt.err (!%p880_p2)
}
  0x1e   : > { %s897_s15 = smov 128   ;;  %s898_s16 = smov 8  }
  0x1f   : > { %835 = dma.hbm_to_vmem [thread:$0]  (!%p961_p5), %s1131_s1, 384, %s214_s27, [#allocation3], %s897_s15, %s897_s15, %s898_s16  }
  0x20   : > { %p1142_p6 = scmp.ne.s32.totalorder %s1140_s28, 0 }
  0x21   : > { %p1143_p8 = scmp.eq.s32.totalorder (!%p1142_p6), %s948_s25, 0 }
  0x22   : > { %251 = sbr.rel (%p1142_p6) target bundleno = 747 (0x2eb), region = 48 }
  0x29   : > { %889 = dma.done.wait (%p1143_p8), [#allocation3], 384   ;;  %p1144_p7 = pmov %p1143_p8 }
  0x2a   : > { %p281_p2 = scmp.lt.s32.totalorder %s948_s25, 1  ;;  %v899_v0 = vmov 0.0|0.0   ;;  %vm900_vm0 = vmmov 0   ;;  %v901_v1 = vmov 0.0   ;;  %v290_v2 = vld [vmem:[#allocation2] sm:$0xff]  ;;  %v291_v3 = vld [vmem:[#allocation2 + $0x8] sm:$0xff] }
  0x2b   : > { %891 = vsyncadd (%p1144_p7), [#allocation3], 4294966912  ;;  %777 = vmatprep.subr.bf16.mxu0 %v899_v0  ;;  %704 = vmatprep.mubr.msk.f32.mxu0 %vm900_vm0, %v901_v1  ;;  %v778_v4 = vpack.c.bf16 %v291_v3, %v290_v2  ;;  %v383_v5 = vld [vmem:[%s1133_s3] sm:$0xff]  ;;  %v384_v6 = vld [vmem:[%s1133_s3 + $0x8] sm:$0xff]  ;;  %vm300_vm1 = vcmask 195584   ;;  %vm578_vm2 = vcmask 64512  }
  0x2c   : > { %s1146_s25 = smov (!%p281_p2, %s948_s25), 1  ;;  %780 = vmatprep.subr.bf16.mxu1 %v899_v0  ;;  %739 = vmatprep.mubr.msk.f32.mxu1 %vm900_vm0, %v901_v1  ;;  %v781_v7 = vpack.c.bf16 %v384_v6, %v383_v5  ;;  %v292_v8 = vld [vmem:[#allocation2 + $0x10] sm:$0xff]  ;;  %v386_v11 = vld [vmem:[%s1133_s3 + $0x18] sm:$0xff]  ;;  %v387_v13 = vld [vmem:[%s1133_s3 + $0x20] sm:$0xff] }
  0x2d   : > { %s652_s19 = sshll.u32 %s1146_s25, 3  ;;  %779 = vmatpush3.bf16.msra.mxu0 %v778_v4  ;;  %v385_v10 = vld [vmem:[%s1133_s3 + $0x10] sm:$0xff]  ;;  %v388_v14 = vld [vmem:[%s1133_s3 + $0x28] sm:$0xff]  ;;  %v390_v17 = vld [vmem:[%s1133_s3 + $0x38] sm:$0xff] }
  0x2e   : > { %s284_s28 = scalar_lea.vmem %s1130_s0, %s652_s19  ;;  %702 = vmatprep.subr.mxu0 %v901_v1  ;;  %782 = vmatpush3.bf16.msra.mxu1 %v781_v7  ;;  %v784_v12 = vpack.c.bf16 %v386_v11, %v385_v10  ;;  %v787_v15 = vpack.c.bf16 %v388_v14, %v387_v13  ;;  %v389_v16 = vld [vmem:[%s1133_s3 + $0x30] sm:$0xff]  ;;  %v391_v19 = vld [vmem:[%s1133_s3 + $0x40] sm:$0xff]  ;;  %v392_v20 = vld [vmem:[%s1133_s3 + $0x48] sm:$0xff]  ;;  %s288_s14 = scalar_lea.vmem %s1137_s7, %s652_s19 }
  0x2f   : > { %v289_v9 = vld [vmem:[%s284_s28] sm:$0xff]  ;;  %783 = vmatprep.subr.bf16.mxu1 %v899_v0  ;;  %v790_v18 = vpack.c.bf16 %v390_v17, %v389_v16  ;;  %v793_v21 = vpack.c.bf16 %v392_v20, %v391_v19  ;;  %v393_v22 = vld [vmem:[%s1133_s3 + $0x50] sm:$0xff]  ;;  %v394_v23 = vld [vmem:[%s1133_s3 + $0x58] sm:$0xff] }
  0x30   : > { %v796_v24 = vpack.c.bf16 %v394_v23, %v393_v22  ;;  %v395_v25 = vld [vmem:[%s1133_s3 + $0x60] sm:$0xff]  ;;  %v396_v26 = vld [vmem:[%s1133_s3 + $0x68] sm:$0xff]  ;;  %v397_v28 = vld [vmem:[%s1133_s3 + $0x70] sm:$0xff] }
  0x31   : > { %703 = vmatpush3.msra.mxu0 %v292_v8  ;;  %v799_v27 = vpack.c.bf16 %v396_v26, %v395_v25  ;;  %v398_v29 = vld [vmem:[%s1133_s3 + $0x78] sm:$0xff]  ;;  %v485_v31 = vld [vmem:[%s1135_s5] sm:$0xff]  ;;  %v486_v32 = vld [vmem:[%s1135_s5 + $0x8] sm:$0xff] }
  0x32   : > { %705 = vmatmul.mubr.msk.f32.vlgmr.msra.gmra.mrb[0].mxu0 %vm300_vm1, %v289_v9  ;;  %804 = vmatprep.subr.bf16.mxu0 %v899_v0  ;;  %v802_v30 = vpack.c.bf16 %v398_v29, %v397_v28  ;;  %v805_v33 = vpack.c.bf16 %v486_v32, %v485_v31  ;;  %v654_v34 = vld [vmem:[%s1132_s2] ss:$0 sm:$0xff]  ;;  %v487_v47 = vld [vmem:[%s1135_s5 + $0x10] sm:$0xff]  ;;  %v488_v48 = vld [vmem:[%s1135_s5 + $0x18] sm:$0xff] }
  0x33   : > { %774 = vmatprep.mubr.msk.f32.mxu0 %vm900_vm0, %v901_v1  ;;  %785 = vmatpush3.bf16.msra.mxu1 %v784_v12  ;;  %v808_v49 = vpack.c.bf16 %v488_v48, %v487_v47  ;;  %v489_v50 = vld [vmem:[%s1135_s5 + $0x20] sm:$0xff]  ;;  %v490_v51 = vld [vmem:[%s1135_s5 + $0x28] sm:$0xff]  ;;  %v491_v53 = vld [vmem:[%s1135_s5 + $0x30] sm:$0xff] }
  0x34   : > { %786 = vmatprep.subr.bf16.mxu1 %v899_v0  ;;  %806 = vmatpush3.bf16.msra.mxu0 %v805_v33  ;;  %v811_v52 = vpack.c.bf16 %v490_v51, %v489_v50  ;;  %v492_v54 = vld [vmem:[%s1135_s5 + $0x38] sm:$0xff]  ;;  %v493_v56 = vld [vmem:[%s1135_s5 + $0x40] sm:$0xff]  ;;  %v494_v57 = vld [vmem:[%s1135_s5 + $0x48] sm:$0xff] }
  0x35   : > { %807 = vmatprep.subr.bf16.mxu0 %v899_v0  ;;  %v814_v55 = vpack.c.bf16 %v492_v54, %v491_v53  ;;  %v817_v58 = vpack.c.bf16 %v494_v57, %v493_v56  ;;  %v495_v59 = vld [vmem:[%s1135_s5 + $0x50] sm:$0xff]  ;;  %v496_v60 = vld [vmem:[%s1135_s5 + $0x58] sm:$0xff]  ;;  %v497_v62 = vld [vmem:[%s1135_s5 + $0x60] sm:$0xff] }
  0x36   : > { %v820_v61 = vpack.c.bf16 %v496_v60, %v495_v59  ;;  %v498_v63 = vld [vmem:[%s1135_s5 + $0x68] sm:$0xff]  ;;  %v499_v2 = vld [vmem:[%s1135_s5 + $0x70] sm:$0xff]  ;;  %v500_v3 = vld [vmem:[%s1135_s5 + $0x78] sm:$0xff] }
  0x37   : > { %788 = vmatpush3.bf16.msra.mxu1 %v787_v15  ;;  %v823_v1 = vpack.c.bf16 %v498_v63, %v497_v62  ;;  %v826_v4 = vpack.c.bf16 %v500_v3, %v499_v2  ;;  %v656_v5 = vld [vmem:[%s1134_s4] ss:$0 sm:$0xff] }
  0x38   : > { %789 = vmatprep.subr.bf16.mxu1 %v899_v0  ;;  %809 = vmatpush3.bf16.msra.mxu0 %v808_v49 }
  0x39   : > { %810 = vmatprep.subr.bf16.mxu0 %v899_v0 }
  0x3b   : > { %791 = vmatpush3.bf16.msra.mxu1 %v790_v18 }
  0x3c   : > { %792 = vmatprep.subr.bf16.mxu1 %v899_v0  ;;  %812 = vmatpush3.bf16.msra.mxu0 %v811_v52 }
  0x3d   : > { %813 = vmatprep.subr.bf16.mxu0 %v899_v0 }
  0x3f   : > { %794 = vmatpush3.bf16.msra.mxu1 %v793_v21 }
  0x40   : > { %795 = vmatprep.subr.bf16.mxu1 %v899_v0  ;;  %815 = vmatpush3.bf16.msra.mxu0 %v814_v55 }
  0x41   : > { %816 = vmatprep.subr.bf16.mxu0 %v899_v0 }
  0x43   : > { %797 = vmatpush3.bf16.msra.mxu1 %v796_v24 }
  0x44   : > { %798 = vmatprep.subr.bf16.mxu1 %v899_v0  ;;  %818 = vmatpush3.bf16.msra.mxu0 %v817_v58 }
  0x45   : > { %819 = vmatprep.subr.bf16.mxu0 %v899_v0 }
  0x47   : > { %800 = vmatpush3.bf16.msra.mxu1 %v799_v27 }
  0x48   : > { %801 = vmatprep.subr.bf16.mxu1 %v899_v0  ;;  %821 = vmatpush3.bf16.msra.mxu0 %v820_v61 }
  0x49   : > { %822 = vmatprep.subr.bf16.mxu0 %v899_v0 }
  0x4b   : > { %803 = vmatpush3.bf16.msra.mxu1 %v802_v30 }
  0x4c   : > { %824 = vmatpush3.bf16.msra.mxu0 %v823_v1 }
  0x4d   : > { %825 = vmatprep.subr.bf16.mxu0 %v899_v0  ;;  %v657_v0 = vld [vmem:[%s1136_s6] ss:$0 sm:$0xff] }
  0x50   : > { %827 = vmatpush3.bf16.msra.mxu0 %v826_v4 }
 0x105   : > { %v370_v35 = vpop.f32.mrb[0].mxu0 }
 0x106   : > { %v371_v36 = vadd.f32 %v654_v34, %v370_v35  ;;  %v706_v37 = vpop.f32.mrb[1].mxu0 }
 0x108   : > { %v374_v38 = vmul.f32 %v371_v36, %v371_v36 }
 0x10a   : > { %v375_v39 = vmul.f32 %v374_v38, %v371_v36 }
 0x10c   : > { %v376_v40 = vmul.f32 0.044715, %v375_v39 }
 0x10e   : > { %v377_v41 = vadd.f32 %v376_v40, %v371_v36 }
 0x110   : > { %v378_v42 = vmul.f32 0.7978846, %v377_v41 }
 0x112   : > { %852 = vtanh.f32 %v378_v42 }
 0x11c   : > { %v853_v43 = vpop.eup %852 }
 0x11d   : > { %v380_v44 = vadd.f32 1.0, %v853_v43 }
 0x11f   : > { %v381_v45 = vmul.f32 0.5, %v380_v44 }
 0x121   : > { %v382_v46 = vmul.f32 %v381_v45, %v371_v36 }
 0x123   : > { %740 = vmatmul.mubr.f32.vlgmr.msra.gmra.mrb[0].mxu1 %v382_v46 }
 0x1f6   : > { %v472_v6 = vpop.f32.mrb[0].mxu1 }
 0x1f7   : > { %v473_v7 = vadd.f32 %v656_v5, %v472_v6  ;;  %v741_v8 = vpop.f32.mrb[1].mxu1 }
 0x1f9   : > { %v476_v9 = vmul.f32 %v473_v7, %v473_v7 }
 0x1fb   : > { %v477_v10 = vmul.f32 %v476_v9, %v473_v7 }
 0x1fd   : > { %v478_v11 = vmul.f32 0.044715, %v477_v10 }
 0x1ff   : > { %v479_v12 = vadd.f32 %v478_v11, %v473_v7 }
 0x201   : > { %v480_v13 = vmul.f32 0.7978846, %v479_v12 }
 0x203   : > { %854 = vtanh.f32 %v480_v13 }
 0x20d   : > { %v855_v14 = vpop.eup %854 }
 0x20e   : > { %v482_v15 = vadd.f32 1.0, %v855_v14 }
 0x210   : > { %v483_v16 = vmul.f32 0.5, %v482_v15 }
 0x212   : > { %v484_v17 = vmul.f32 %v483_v16, %v473_v7 }
 0x214   : > { %775 = vmatmul.mubr.f32.vlgmr.msra.gmra.mrb[2].mxu0 %v484_v17 }
 0x2e7   : > { %v574_v18 = vpop.f32.mrb[2].mxu0 }
 0x2e8   : > { %v575_v19 = vadd.f32 %v657_v0, %v574_v18  ;;  %v776_v20 = vpop.f32.mrb[3].mxu0 }
 0x2ea   : > { %579 = vst.msk [vmem:[%s288_s14] sm:$0xff] %vm578_vm2, %v575_v19 }
 0x2eb PF: > { %s18_s24 = sadd.s32 1, %s894_s24  }
 0x2ec   : > { %p15_p3 = scmp.ge.s32.totalorder %s18_s24, 4  }
 0x2ee   :  { %17 = sbr.rel (!%p15_p3) target bundleno = 1 (0x1), region = 83 }
 0x2f5   :  { %599 = vsyncpa [#allocation3], 1 }
 0x2f6   :  { %601 = vsyncpa [#allocation3 + $0x1], 1 }

</bundles_post_ra>
